<compile_context>
chip_gen: v7x
topology: tpu7x:2x2x1
jax: 0.10.0
libtpu: 0.0.40
codegen_flags: <defaults>
</compile_context>

<pallas_src>
import functools

import jax
import jax.numpy as jnp
from jax.experimental import pallas as pl
from jax.experimental.pallas import tpu as pltpu


def _vmem_budget():
    """Returns (scoped vmem_limit_bytes, per-tile x byte budget) for this generation."""
    try:
        cap = int(pltpu.get_tpu_info().vmem_capacity_bytes)
    except Exception:
        cap = 64 << 20  # conservative fallback (v7x-sized VMEM)
    if cap >= (100 << 20):          # v5e / v6e: 128 MiB physical VMEM per core
        return 64 << 20, 6 << 20
    return 40 << 20, 3 << 20        # v7x: 64 MiB per TensorCore


def _choose_s_tile(S, C, itemsize, budget_bytes):
    """Largest spatial tile (multiple of 128) whose (C, st) slab fits the byte budget."""
    if C * S * itemsize <= budget_bytes:
        return S
    t = max(128, ((budget_bytes // (C * itemsize)) // 128) * 128)
    t = min(t, S)
    if S % 128 == 0:
        # Prefer a near-budget tile that divides S (no masked remainder tile), but never
        # shrink below ~half the budget just to find a divisor.
        for cand in range(t, max(t // 2 - 1, 127), -128):
            if S % cand == 0:
                return cand
    return t


def _fcnet_mask(avg, mx, w1, b1, w2, b2):
    """sigmoid(fcnet(avg) + fcnet(mx)) with avg/mx stacked so fcnet runs once."""
    v = jnp.concatenate([avg, mx], axis=0)                          # [2, C]
    h = jnp.tanh(jnp.dot(v, w1, preferred_element_type=jnp.float32) + b1)
    o = jnp.tanh(jnp.dot(h, w2, preferred_element_type=jnp.float32) + b2)
    return jax.nn.sigmoid(o[0:1, :] + o[1:2, :])                    # [1, C]


# ----------------------------- Fused single-pass kernel -----------------------------

def _band_fused_kernel(x_ref, w1_ref, b1_ref, w2_ref, b2_ref, out_ref, m_ref, *, inv_s):
    """Grid (B,): whole (C, S) slab resident; reduce + fcnet + sigmoid + scale."""
    x = x_ref[...]                                                  # [1, C, S] native dtype
    xf = x.astype(jnp.float32)
    avg = jnp.sum(xf, axis=-1) * inv_s                              # [1, C]
    mx = jnp.max(xf, axis=-1)                                       # [1, C]
    m = _fcnet_mask(avg, mx, w1_ref[...], b1_ref[...], w2_ref[...], b2_ref[...])
    m_ref[...] = m[:, None, :]                                      # [1, 1, C] f32
    out_ref[...] = x * m[:, :, None].astype(x.dtype)                # multiply in x.dtype


# ----------------------------- Two-pass kernels --------------------------------------

def _band_reduce_kernel(x_ref, w1_ref, b1_ref, w2_ref, b2_ref, m_ref,
                        sum_acc, max_acc, *, inv_s, s_tile, s_total, needs_mask):
    """Grid (B, S_tiles): accumulate per-channel sum/max, finalize fcnet+sigmoid -> M."""
    s_idx = pl.program_id(1)

    x = x_ref[...].astype(jnp.float32)                              # [1, C, st]
    if needs_mask:
        pos = s_idx * s_tile + jax.lax.broadcasted_iota(jnp.int32, x.shape, 2)
        valid = pos < s_total
        x_sum = jnp.where(valid, x, 0.0)
        x_max = jnp.where(valid, x, -jnp.inf)
    else:
        x_sum, x_max = x, x
    part_sum = jnp.sum(x_sum, axis=-1)                              # [1, C]
    part_max = jnp.max(x_max, axis=-1)                              # [1, C]

    @pl.when(s_idx == 0)
    def _():
        sum_acc[...] = jnp.zeros_like(sum_acc)
        max_acc[...] = jnp.full_like(max_acc, -jnp.inf)

    sum_acc[...] = sum_acc[...] + part_sum
    max_acc[...] = jnp.maximum(max_acc[...], part_max)

    @pl.when(s_idx == pl.num_programs(1) - 1)
    def _():
        m = _fcnet_mask(sum_acc[...] * inv_s, max_acc[...],
                        w1_ref[...], b1_ref[...], w2_ref[...], b2_ref[...])
        m_ref[...] = m[:, None, :]                                  # [1, 1, C]


def _band_scale_kernel(m_ref, x_ref, out_ref):
    """Grid (B, S_tiles): out = x * M (native dtype multiply, broadcast over lanes)."""
    scale = m_ref[...].astype(x_ref.dtype)                          # [1, C, 1]
    out_ref[...] = x_ref[...] * scale


# ----------------------------- Wrapper ------------------------------------------------

def band_attention_3d(x, w1, b1, w2, b2, *, s_tile_bytes=None,
                      force_two_pass=False, donate_x=False):
    """x: [B, C, D, H, W]. Returns (x * M, M) with M: [B, C] float32."""
    B, C, D, H, W = x.shape
    S = D * H * W
    Ch = w1.shape[1]
    itemsize = int(jnp.dtype(x.dtype).itemsize)

    vmem_limit, default_tile_bytes = _vmem_budget()
    tile_bytes = int(s_tile_bytes) if s_tile_bytes is not None else default_tile_bytes

    xf = x.reshape(B, C, S)                 # keep input dtype: no upcast at the wrapper
    b1r = b1.reshape(1, Ch)
    b2r = b2.reshape(1, C)
    slab_bytes = C * S * itemsize

    # ---- Fused single-pass path: 2x|x| HBM traffic instead of 3x|x| ----
    if (not force_two_pass) and slab_bytes <= tile_bytes:
        out_flat, m_b1c = pl.pallas_call(
            functools.partial(_band_fused_kernel, inv_s=1.0 / S),
            out_shape=(jax.ShapeDtypeStruct((B, C, S), x.dtype),
                       jax.ShapeDtypeStruct((B, 1, C), jnp.float32)),
            grid=(B,),
            in_specs=[
                pl.BlockSpec((1, C, S), lambda b: (b, 0, 0)),
                pl.BlockSpec((C, Ch), lambda b: (0, 0)),
                pl.BlockSpec((1, Ch), lambda b: (0, 0)),
                pl.BlockSpec((Ch, C), lambda b: (0, 0)),
                pl.BlockSpec((1, C), lambda b: (0, 0)),
            ],
            out_specs=(pl.BlockSpec((1, C, S), lambda b: (b, 0, 0)),
                       pl.BlockSpec((1, 1, C), lambda b: (b, 0, 0))),
            compiler_params=pltpu.CompilerParams(
                dimension_semantics=("parallel",),
                vmem_limit_bytes=vmem_limit),
            cost_estimate=pl.CostEstimate(
                flops=B * (3 * C * S + 8 * C * Ch),
                transcendentals=B * (2 * Ch + 3 * C),
                bytes_accessed=2 * B * C * S * itemsize + B * C * 4),
            input_output_aliases=({0: 0} if donate_x else {}),
        )(xf, w1, b1r, w2, b2r)
        return out_flat.reshape(B, C, D, H, W), m_b1c.reshape(B, C)

    # ---- Two-pass path ----
    st = _choose_s_tile(S, C, itemsize, tile_bytes)
    n_s = pl.cdiv(S, st)
    needs_mask = (S % st) != 0

    # Pass 1: per-(batch, channel) mean & max reduction + fcnet + sigmoid -> M.
    m_b1c = pl.pallas_call(
        functools.partial(_band_reduce_kernel, inv_s=1.0 / S,
                          s_tile=st, s_total=S, needs_mask=needs_mask),
        out_shape=jax.ShapeDtypeStruct((B, 1, C), jnp.float32),
        grid=(B, n_s),
        in_specs=[
            pl.BlockSpec((1, C, st), lambda b, s: (b, 0, s)),
            pl.BlockSpec((C, Ch), lambda b, s: (0, 0)),
            pl.BlockSpec((1, Ch), lambda b, s: (0, 0)),
            pl.BlockSpec((Ch, C), lambda b, s: (0, 0)),
            pl.BlockSpec((1, C), lambda b, s: (0, 0)),
        ],
        out_specs=pl.BlockSpec((1, 1, C), lambda b, s: (b, 0, 0)),
        scratch_shapes=[
            pltpu.VMEM((1, C), jnp.float32),   # running sum
            pltpu.VMEM((1, C), jnp.float32),   # running max
        ],
        compiler_params=pltpu.CompilerParams(
            dimension_semantics=("parallel", "arbitrary"),
            vmem_limit_bytes=vmem_limit),
        cost_estimate=pl.CostEstimate(
            flops=2 * B * C * S + 8 * B * C * Ch,
            transcendentals=B * (2 * Ch + 3 * C),
            bytes_accessed=B * C * S * itemsize + B * C * 4),
    )(xf, w1, b1r, w2, b2r)

    m = m_b1c.reshape(B, C)

    # Pass 2: out = x * M, fully parallel elementwise scale (no weights passed).
    out_flat = pl.pallas_call(
        _band_scale_kernel,
        out_shape=jax.ShapeDtypeStruct((B, C, S), x.dtype),
        grid=(B, n_s),
        in_specs=[
            pl.BlockSpec((1, C, 1), lambda b, s: (b, 0, 0)),
            pl.BlockSpec((1, C, st), lambda b, s: (b, 0, s)),
        ],
        out_specs=pl.BlockSpec((1, C, st), lambda b, s: (b, 0, s)),
        compiler_params=pltpu.CompilerParams(
            dimension_semantics=("parallel", "parallel"),
            vmem_limit_bytes=vmem_limit),
        cost_estimate=pl.CostEstimate(
            flops=B * C * S,
            transcendentals=0,
            bytes_accessed=2 * B * C * S * itemsize + B * C * 4),
        input_output_aliases=({1: 0} if donate_x else {}),
    )(m.reshape(B, C, 1), xf)

    return out_flat.reshape(B, C, D, H, W), m


# ----------------------------- Reference & test ---------------------------------------

def reference(x, w1, b1, w2, b2):
    B, C = x.shape[:2]
    xf = x.reshape(B, C, -1).astype(jnp.float32)
    avg = jnp.mean(xf, axis=-1)
    mx = jnp.max(xf, axis=-1)

    def fcnet(v):
        h = jnp.tanh(v @ w1 + b1)
        return jnp.tanh(h @ w2 + b2)

    m = jax.nn.sigmoid(fcnet(avg) + fcnet(mx))
    return x * m[:, :, None, None, None].astype(x.dtype), m


if __name__ == "__main__":
    key = jax.random.PRNGKey(0)
    kx, k1, k2, k3, k4, kx2 = jax.random.split(key, 6)

    B, C, D, H, W = 2, 16, 4, 8, 8        # S = 256
    reduction = 4
    Ch = C // reduction

    x = jax.random.normal(kx, (B, C, D, H, W), dtype=jnp.float32)

    # Deterministic synthetic parameters (PyTorch Linear-like uniform init scale).
    bound1 = 1.0 / (C ** 0.5)
    bound2 = 1.0 / (Ch ** 0.5)
    w1 = jax.random.uniform(k1, (C, Ch), jnp.float32, -bound1, bound1)
    b1 = jax.random.uniform(k2, (Ch,), jnp.float32, -bound1, bound1)
    w2 = jax.random.uniform(k3, (Ch, C), jnp.float32, -bound2, bound2)
    b2 = jax.random.uniform(k4, (C,), jnp.float32, -bound2, bound2)

    out_ref, m_ref = reference(x, w1, b1, w2, b2)

    # 1) Default dispatch -> fused single-pass kernel (per-batch slab fits VMEM budget).
    out, m = band_attention_3d(x, w1, b1, w2, b2)
    jax.block_until_ready((out, m))
    assert out.shape == (B, C, D, H, W) and m.shape == (B, C)
    assert jnp.allclose(m, m_ref, atol=1e-5, rtol=1e-5)
    assert jnp.allclose(out, out_ref, atol=1e-5, rtol=1e-5)

    # 2) Forced two-pass path with a tiny byte budget (st=128 -> 2 spatial tiles):
    #    exercises the accumulate/finalize pipeline.
    out2, m2 = band_attention_3d(x, w1, b1, w2, b2,
                                 s_tile_bytes=8192, force_two_pass=True)
    jax.block_until_ready((out2, m2))
    assert jnp.allclose(m2, m_ref, atol=1e-5, rtol=1e-5)
    assert jnp.allclose(out2, out_ref, atol=1e-5, rtol=1e-5)

    # 3) Awkward spatial size (S=240, not a multiple of the 128-wide tile):
    #    exercises the cdiv grid + masked remainder tile in the reduction.
    D3, H3, W3 = 3, 8, 10
    x3 = jax.random.normal(kx2, (B, C, D3, H3, W3), dtype=jnp.float32)
    out3, m3 = band_attention_3d(x3, w1, b1, w2, b2,
                                 s_tile_bytes=8192, force_two_pass=True)
    jax.block_until_ready((out3, m3))
    out3_ref, m3_ref = reference(x3, w1, b1, w2, b2)
    assert jnp.allclose(m3, m3_ref, atol=1e-5, rtol=1e-5)
    assert jnp.allclose(out3, out3_ref, atol=1e-5, rtol=1e-5)

    print("KERNEL_OK")
</pallas_src>

<mosaic_0001>
module attributes {stable_mosaic.version = 11 : i64} {
  func.func @_band_fused_kernel(%arg0: i32, %arg1: memref<1x16x256xf32, #tpu.memory_space<vmem>>, %arg2: memref<16x4xf32, #tpu.memory_space<vmem>>, %arg3: memref<1x4xf32, #tpu.memory_space<vmem>>, %arg4: memref<4x16xf32, #tpu.memory_space<vmem>>, %arg5: memref<1x16xf32, #tpu.memory_space<vmem>>, %arg6: memref<1x16x256xf32, #tpu.memory_space<vmem>>, %arg7: memref<1x1x16xf32, #tpu.memory_space<vmem>>) attributes {dimension_semantics = [#tpu.dimension_semantics<parallel>], iteration_bounds = array<i64: 2>, scalar_prefetch = 0 : i64, scratch_operands = 0 : i64, tpu.core_type = #tpu.core_type<tc>, window_params = [{transform_indices = @transform_0, window_bounds = array<i64: 1, 16, 256>}, {pipeline_mode = #tpu.pipeline_mode<synchronous>, transform_indices = @transform_1, window_bounds = array<i64: 16, 4>}, {pipeline_mode = #tpu.pipeline_mode<synchronous>, transform_indices = @transform_2, window_bounds = array<i64: 1, 4>}, {pipeline_mode = #tpu.pipeline_mode<synchronous>, transform_indices = @transform_3, window_bounds = array<i64: 4, 16>}, {pipeline_mode = #tpu.pipeline_mode<synchronous>, transform_indices = @transform_4, window_bounds = array<i64: 1, 16>}, {transform_indices = @transform_5, window_bounds = array<i64: 1, 16, 256>}, {transform_indices = @transform_6, window_bounds = array<i64: 1, 1, 16>}]} {
    %c0 = arith.constant 0 : index
    %c0_0 = arith.constant 0 : index
    %c0_1 = arith.constant 0 : index
    %0 = vector.load %arg1[%c0, %c0_0, %c0_1] : memref<1x16x256xf32, #tpu.memory_space<vmem>>, vector<1x16x256xf32>
    %cst = arith.constant dense<0.000000e+00> : vector<1x16xf32>
    %1 = vector.multi_reduction <add>, %0, %cst [2] : vector<1x16x256xf32> to vector<1x16xf32>
    %cst_2 = arith.constant 3.906250e-03 : f32
    %2 = vector.broadcast %cst_2 : f32 to vector<1x16xf32>
    %3 = arith.mulf %1, %2 : vector<1x16xf32>
    %cst_3 = arith.constant dense<0xFF800000> : vector<1x16xf32>
    %4 = vector.multi_reduction <maximumf>, %0, %cst_3 [2] : vector<1x16x256xf32> to vector<1x16xf32>
    %c0_4 = arith.constant 0 : index
    %c0_5 = arith.constant 0 : index
    %5 = vector.load %arg2[%c0_4, %c0_5] : memref<16x4xf32, #tpu.memory_space<vmem>>, vector<16x4xf32>
    %c0_6 = arith.constant 0 : index
    %c0_7 = arith.constant 0 : index
    %6 = vector.load %arg3[%c0_6, %c0_7] : memref<1x4xf32, #tpu.memory_space<vmem>>, vector<1x4xf32>
    %c0_8 = arith.constant 0 : index
    %c0_9 = arith.constant 0 : index
    %7 = vector.load %arg4[%c0_8, %c0_9] : memref<4x16xf32, #tpu.memory_space<vmem>>, vector<4x16xf32>
    %c0_10 = arith.constant 0 : index
    %c0_11 = arith.constant 0 : index
    %8 = vector.load %arg5[%c0_10, %c0_11] : memref<1x16xf32, #tpu.memory_space<vmem>>, vector<1x16xf32>
    %9 = tpu.concatenate %3, %4 in 0 : vector<1x16xf32>, vector<1x16xf32> -> vector<2x16xf32>
    %cst_12 = arith.constant dense<0.000000e+00> : vector<2x4xf32>
    %10 = tpu.matmul %9, %5, %cst_12 {dimension_numbers = #tpu.dot_dimension_numbers<[1], [0], [0], [1], [0, 0, 1, 1], [], []>} : vector<2x16xf32>, vector<16x4xf32>, vector<2x4xf32> -> vector<2x4xf32>
    %11 = vector.broadcast %6 : vector<1x4xf32> to vector<2x4xf32>
    %12 = arith.addf %10, %11 : vector<2x4xf32>
    %13 = math.tanh %12 : vector<2x4xf32>
    %cst_13 = arith.constant dense<0.000000e+00> : vector<2x16xf32>
    %14 = tpu.matmul %13, %7, %cst_13 {dimension_numbers = #tpu.dot_dimension_numbers<[1], [0], [0], [1], [0, 0, 1, 1], [], []>} : vector<2x4xf32>, vector<4x16xf32>, vector<2x16xf32> -> vector<2x16xf32>
    %15 = vector.broadcast %8 : vector<1x16xf32> to vector<2x16xf32>
    %16 = arith.addf %14, %15 : vector<2x16xf32>
    %17 = math.tanh %16 : vector<2x16xf32>
    %18 = vector.extract_strided_slice %17 {offsets = [0, 0], sizes = [1, 16], strides = [1, 1]} : vector<2x16xf32> to vector<1x16xf32>
    %19 = vector.extract_strided_slice %17 {offsets = [1, 0], sizes = [1, 16], strides = [1, 1]} : vector<2x16xf32> to vector<1x16xf32>
    %20 = arith.addf %18, %19 : vector<1x16xf32>
    %21 = arith.negf %20 : vector<1x16xf32>
    %22 = math.exp %21 : vector<1x16xf32>
    %cst_14 = arith.constant 1.000000e+00 : f32
    %23 = vector.broadcast %cst_14 : f32 to vector<1x16xf32>
    %24 = arith.addf %23, %22 : vector<1x16xf32>
    %25 = arith.divf %23, %24 : vector<1x16xf32>
    %26 = vector.shape_cast %25 : vector<1x16xf32> to vector<1x1x16xf32>
    %c0_15 = arith.constant 0 : index
    %c0_16 = arith.constant 0 : index
    %c0_17 = arith.constant 0 : index
    %27 = vector.load %arg7[%c0_15, %c0_16, %c0_17] : memref<1x1x16xf32, #tpu.memory_space<vmem>>, vector<1x1x16xf32>
    tpu.vector_store %arg7[%c0_15, %c0_16, %c0_17], %26 {strides = array<i32>} : memref<1x1x16xf32, #tpu.memory_space<vmem>>, vector<1x1x16xf32>,
    %28 = vector.shape_cast %25 : vector<1x16xf32> to vector<1x16x1xf32>
    %29 = vector.broadcast %28 : vector<1x16x1xf32> to vector<1x16x256xf32>
    %30 = arith.mulf %0, %29 : vector<1x16x256xf32>
    %c0_18 = arith.constant 0 : index
    %c0_19 = arith.constant 0 : index
    %c0_20 = arith.constant 0 : index
    %31 = vector.load %arg6[%c0_18, %c0_19, %c0_20] : memref<1x16x256xf32, #tpu.memory_space<vmem>>, vector<1x16x256xf32>
    tpu.vector_store %arg6[%c0_18, %c0_19, %c0_20], %30 {strides = array<i32>} : memref<1x16x256xf32, #tpu.memory_space<vmem>>, vector<1x16x256xf32>,
    return
  }
  func.func @transform_0(%arg0: i32) -> (i32, i32, i32) {
    %c0_i32 = arith.constant 0 : i32
    %c0_i32_0 = arith.constant 0 : i32
    %c0_i32_1 = arith.constant 0 : i32
    return %arg0, %c0_i32, %c0_i32_0 : i32, i32, i32
  }
  func.func @transform_1(%arg0: i32) -> (i32, i32) {
    %c0_i32 = arith.constant 0 : i32
    %c0_i32_0 = arith.constant 0 : i32
    %c0_i32_1 = arith.constant 0 : i32
    return %c0_i32, %c0_i32_0 : i32, i32
  }
  func.func @transform_2(%arg0: i32) -> (i32, i32) {
    %c0_i32 = arith.constant 0 : i32
    %c0_i32_0 = arith.constant 0 : i32
    %c0_i32_1 = arith.constant 0 : i32
    return %c0_i32, %c0_i32_0 : i32, i32
  }
  func.func @transform_3(%arg0: i32) -> (i32, i32) {
    %c0_i32 = arith.constant 0 : i32
    %c0_i32_0 = arith.constant 0 : i32
    %c0_i32_1 = arith.constant 0 : i32
    return %c0_i32, %c0_i32_0 : i32, i32
  }
  func.func @transform_4(%arg0: i32) -> (i32, i32) {
    %c0_i32 = arith.constant 0 : i32
    %c0_i32_0 = arith.constant 0 : i32
    %c0_i32_1 = arith.constant 0 : i32
    return %c0_i32, %c0_i32_0 : i32, i32
  }
  func.func @transform_5(%arg0: i32) -> (i32, i32, i32) {
    %c0_i32 = arith.constant 0 : i32
    %c0_i32_0 = arith.constant 0 : i32
    %c0_i32_1 = arith.constant 0 : i32
    return %arg0, %c0_i32, %c0_i32_0 : i32, i32, i32
  }
  func.func @transform_6(%arg0: i32) -> (i32, i32, i32) {
    %c0_i32 = arith.constant 0 : i32
    %c0_i32_0 = arith.constant 0 : i32
    %c0_i32_1 = arith.constant 0 : i32
    return %arg0, %c0_i32, %c0_i32_0 : i32, i32, i32
  }
}

</mosaic_0001>

<bundles_post_ra>
// kernel: tpu_custom_call.1
= control target key start
LH: loop header
LB: loop body
LE: loop exit
PB: predicated region body
PF: predicated region fallthrough
CT: control target
= control target key end

     0   :  { %12 = vsyncpa [#allocation3], 0  ;;  %s1178_s0 = inlined_call_operand.hbm [shape: f32[2,16,256], index: 0, kind: input, shape index: {}]   ;;  %s1179_s1 = inlined_call_operand.vmem [shape: f32[16,4], index: 1, kind: input, shape index: {}]   ;;  %s1180_s2 = inlined_call_operand.vmem [shape: f32[1,4], index: 2, kind: input, shape index: {}]   ;;  %s1181_s3 = inlined_call_operand.vmem [shape: f32[4,16], index: 3, kind: input, shape index: {}]   ;;  %s1182_s4 = inlined_call_operand.vmem [shape: f32[1,16], index: 4, kind: input, shape index: {}]   ;;  %s1183_s5 = inlined_call_operand.hbm [shape: f32[2,16,256], index: 5, kind: output, shape index: {0}]   ;;  %s1184_s6 = inlined_call_operand.hbm [shape: f32[2,1,16], index: 6, kind: output, shape index: {1}]  }
   0x1   :  { %14 = vsyncpa [#allocation3 + $0x1], 0 }
   0x2   :  { %15 = vsyncpa [#allocation4], 0 }
   0x3   :  { %17 = vsyncpa [#allocation4 + $0x1], 0 }
   0x4   :  { %18 = vsyncpa [#allocation7], 0 }
   0x5   :  { %20 = vsyncpa [#allocation7 + $0x1], 0  ;;  %s946_s21 = smov 0   ;;  %s948_s22 = smov 0  }
   0x6   :  { %s950_s23 = smov 0   ;;  %s952_s24 = smov 0  }
   0x7 LB: > { %s967_s25 = sadd.s32 4294967295, %s899_s24   ;;  %s662_s26 = sadd.s32 4294967294, %s899_s24   ;;  %s899_s24 = sphi %s952_s24, %s1197_s24   ;;  %s895_s23 = sphi %s950_s23, %s1196_s23   ;;  %s891_s22 = sphi %s948_s22, %s1195_s22   ;;  %s887_s21 = sphi %s946_s21, %s1194_s21  }
   0x8   : > { %s971_s27 = sadd.s32 1, %s899_s24   ;;  %s33_s28 = sadd.s32 1, %s895_s23 }
   0x9   : > { %s30_s29 = ssub.s32 %s899_s24, %s971_s27  ;;  %p40_p0 = scmp.ne.s32.totalorder %s895_s23, %s891_s22 }
   0xa   : > { %p31_p1 = scmp.eq.s32.totalorder %s30_s29, 0  ;;  %p41_p2 = scmp.eq.s32.totalorder %s899_s24, 0 }
   0xb   : > { %p46_p3 = scmp.ne.s32.totalorder %s891_s22, %s887_s21  ;;  %p47_p4 = scmp.eq.s32.totalorder %s967_s25, 0 }
   0xc   : > { %s983_s30 = scalar_select %p31_p1, %s895_s23, %s33_s28  }
   0xd   : > { %p985_p5 = por %p41_p2, %p40_p0  ;;  %p989_p6 = por %p47_p4, %p46_p3 }
   0xe   : > { %p154_p7 = scmp.eq.s32.totalorder %s967_s25, 1  ;;  %p160_p8 = scmp.eq.s32.totalorder %s662_s26, 1 }
   0xf   : > { %p722_p10 = scmp.lt.s32.totalorder %s899_s24, 2  ;;  %s218_s11 = sand.u32 1, %s895_s23  }
  0x10   : > { %p996_p11 = por %p154_p7, %p40_p0  ;;  %p1000_p12 = por %p160_p8, %p46_p3 }
  0x11   : > { %s683_s12 = sshll.u32 %s899_s24, 9  ;;  %s665_s13 = sshll.u32 %s218_s11, 5 }
  0x12   : > { %s1188_s9 = scalar_select %p996_p11, 1, 0 }
  0x13   : > { %s1189_s10 = scalar_select %p1000_p12, 1, 0 }
  0x14   : > { %s1009_s16 = scalar_lea.hbm %s1178_s0, %s683_s12  ;;  %s222_s17 = scalar_lea.vmem [#allocation2], %s665_s13 }
  0x15   : > { %s229_s18 = sshll.u32 %s222_s17, 4  ;;  %p1013_p13 = pnand %p722_p10, %p985_p5  ;;  %s1017_s18 = int_to_ptr.vmem [resolvable:$true] %s229_s18 }
  0x16   : > { %s1019_s20 = scalar_lea.sflag [#allocation3], %s218_s11  ;;  %s771_s26 = scalar_lea.hbm %s1009_s16, 512 }
  0x17   : > { %p772_p0 = scmp.ne.s32.totalorder %s1009_s16, %s771_s26  ;;  %p773_p1 = pneg %p1013_p13 }
  0x18   : > { %s776_s7 = scalar_lea.hbm %s1178_s0, 1024  ;;  %p777_p4 = scmp.lt.u32.totalorder %s1009_s16, %s1178_s0 }
  0x19   : > { %p774_p2 = pnand %p773_p1, %p772_p0  ;;  %p778_p5 = scmp.lt.u32.totalorder %s776_s7, %s771_s26 }
  0x1a   : > { %p780_p8 = scmp.lt.u32.totalorder %s771_s26, %s1009_s16 }
  0x1b   : > { %p775_p3 = pneg %p774_p2  ;;  %p779_p7 = por %p778_p5, %p777_p4 }
  0x1d   : > { %p781_p10 = por %p780_p8, %p779_p7 }
  0x1f   : > { %p782_p9 = pnand %p781_p10, %p775_p3 }
  0x21   : > { %785 = shalt.err (!%p782_p9)
}
  0x22   : > { %s786_s11 = scalar_lea.vmem %s1017_s18, 512  ;;  %s901_s14 = smov [#allocation2]  }
  0x23   : > { %p787_p0 = scmp.ne.s32.totalorder %s1017_s18, %s786_s11  ;;  %s791_s15 = sshll.u32 %s901_s14, 4  ;;  %s792_s15 = int_to_ptr.vmem [resolvable:$false] %s791_s15 }
  0x24   : > { %s793_s17 = scalar_lea.vmem %s792_s15, 1024  ;;  %p794_p11 = scmp.lt.s32.totalorder %s1017_s18, %s792_s15 }
  0x25   : > { %p789_p2 = pnand %p787_p0, %p773_p1  ;;  %p795_p4 = scmp.lt.s32.totalorder %s793_s17, %s786_s11 }
  0x27   : > { %p790_p12 = pneg %p789_p2  ;;  %p796_p5 = por %p795_p4, %p794_p11 }
  0x29   : > { %p797_p7 = pnand %p796_p5, %p790_p12 }
  0x2b   : > { %800 = shalt.err (!%p797_p7)
}
  0x2c   : > { %s902_s26 = smov 256   ;;  %s903_s28 = smov 16  }
  0x2d   : > { %714 = dma.hbm_to_vmem [thread:$0]  (!%p1013_p13), %s1009_s16, 512, %s1017_s18, %s1019_s20, %s902_s26, %s902_s26, %s903_s28  }
  0x2e   : > { %p668_p9 = scmp.ge.s32.totalorder %s899_s24, 1  ;;  %p237_p1 = scmp.lt.s32.totalorder %s899_s24, 3 }
  0x30   : > { %p238_p3 = pnand %p668_p9, %p237_p1 }
  0x31   : > { %s1050_s29 = sand.u32 (!%p238_p3), 1, %s891_s22  }
  0x32   : > { %241 = sbr.rel (%p238_p3) target bundleno = 839 (0x347), region = 40  ;;  %s669_s7 = sshll.u32 (!%p238_p3), %s1050_s29, 5 }
  0x33   : > { %s244_s12 = scalar_lea.sflag (!%p238_p3), [#allocation3], %s1050_s29  ;;  %s247_s13 = scalar_lea.vmem (!%p238_p3), [#allocation2], %s669_s7 }
  0x39   : > { %874 = dma.done.wait (%p989_p6), %s244_s12, 512  }
  0x3a   : > { %876 = vsyncadd (%p989_p6), %s244_s12, 4294966784  ;;  %v1060_v0 = vld [vmem:[%s247_s13] sm:$0xff]  ;;  %v1062_v1 = vld [vmem:[%s247_s13 + $0x8] sm:$0xff]  ;;  %v904_v11 = vmov 0.0|0.0   ;;  %vm905_vm0 = vmmov 0   ;;  %v906_v12 = vmov 0.0   ;;  %v305_v13 = vlaneseq }
  0x3b   : > { %v1064_v2 = vld [vmem:[%s247_s13 + $0x10] sm:$0xff]  ;;  %v292_v3 = vmax.f32 %v1060_v0, %v1062_v1  ;;  %v284_v4 = vadd.f32 %v1062_v1, %v1060_v0  ;;  %v1070_v5 = vld [vmem:[%s247_s13 + $0x18] sm:$0xff]  ;;  %v298_v8 = vld [vmem:[%s1179_s1] sm:$0xff]  ;;  %702 = vmatprep.subr.bf16.mxu0 %v904_v11  ;;  %694 = vmatprep.mubr.msk.f32.mxu0 %vm905_vm0, %v906_v12  ;;  %vm316_vm1 = vcmask 130112   ;;  %vm331_vm2 = vcmask 1040384   ;;  %s680_s28 = sshll.u32 %s967_s25, 4 }
  0x3c   : > { %v295_v6 = vmax.f32 %v1064_v2, %v1070_v5  ;;  %v287_v7 = vadd.f32 %v1070_v5, %v1064_v2  ;;  %v299_v9 = vld [vmem:[%s1179_s1 + $0x8] sm:$0xff]  ;;  %697 = vmatprep.subr.mxu1 %v906_v12  ;;  %699 = vmatprep.mubr.msk.f32.mxu1 %vm905_vm0, %v906_v12  ;;  %v306_v14 = vand.u32 127, %v305_v13  ;;  %v308_v16 = vshrl.u32 %v305_v13, 7  ;;  %v301_v32 = vld [vmem:[%s1181_s3] sm:$0xf]  ;;  %s279_s12 = scalar_lea.vmem [#allocation6], %s1050_s29  ;;  %s1096_s18 = scalar_lea.hbm %s1184_s6, %s680_s28 }
  0x3d   : > { %293 = vmax.xlane.f32.xlu1 %v292_v3  ;;  %285 = vadd.xlane.f32.xlu0 %v284_v4  ;;  %v703_v10 = vpack.c.bf16 %v299_v9, %v298_v8  ;;  %vm339_vm3 = vcmask 130048   ;;  %vm424_vm4 = vcmask 1043456   ;;  %v671_v33 = vld [vmem:[%s1180_s2] ss:$0 sm:$0xff]  ;;  %vm420_vm5 = vcmask 31744   ;;  %s564_s13 = sshll.u32 %s279_s12, 4  ;;  %s1098_s13 = int_to_ptr.vmem [resolvable:$true] %s564_s13 }
  0x3e   : > { %v311_v15 = vadd.s32 4294967288, %v306_v14  ;;  %v309_v20 = vsub.s32 %v306_v14, %v308_v16  ;;  %698 = vmatpush3.msk.msra.mxu1 %vm424_vm4, %v301_v32  ;;  %v673_v38 = vld [vmem:[%s1182_s4] ss:$0 sm:$0xff]  ;;  %v513_v48 = vsub.s32 0, %v308_v16  ;;  %vm509_vm6 = vcmask 122880   ;;  %s536_s19 = scalar_lea.sflag [#allocation7], %s1050_s29 }
  0x3f   : > { %704 = vmatpush3.bf16.msra.mxu0 %v703_v10  ;;  %s801_s20 = scalar_lea.vmem %s1098_s13, 16  ;;  %p1191_p11 = scmp.ne.s32.totalorder %s1188_s9, 0 }
  0x40   : > { %v314_v19 = vsub.s32 %v311_v15, %v308_v16  ;;  %p802_p6 = scmp.ne.s32.totalorder %s1098_s13, %s801_s20  ;;  %s907_s11 = smov [#allocation6]  }
  0x41   : > { %296 = vmax.xlane.f32.xlu1 %v295_v6  ;;  %288 = vadd.xlane.f32.xlu0 %v287_v7  ;;  %s805_s14 = sshll.u32 %s907_s11, 4  ;;  %s806_s14 = int_to_ptr.vmem [resolvable:$false] %s805_s14 }
  0x42   : > { %p803_p12 = pnand %p802_p6, %p1191_p11  ;;  %s807_s15 = scalar_lea.vmem %s806_s14, 32 }
  0x43   : > { %p808_p8 = scmp.lt.s32.totalorder %s1098_s13, %s806_s14  ;;  %p809_p10 = scmp.lt.s32.totalorder %s807_s15, %s801_s20 }
  0x44   : > { %p804_p13 = pneg %p803_p12 }
  0x45   : > { %p810_p0 = por %p809_p10, %p808_p8 }
  0x47   : > { %p811_p2 = pnand %p810_p0, %p804_p13 }
  0xca   : > { %v294_v17 = vpop.xlane.xlu1 %293  ;;  %v286_v18 = vpop.xlane.xlu0 %285 }
  0xcb   : > { %v290_v21 = vmul.f32 0.00390625, %v286_v18  ;;  %v324_v26 = vrot.slane %v294_v17, %v309_v20 }
  0xcd   : > { %v310_v27 = vrot.slane %v290_v21, %v309_v20 }
  0xce   : > { %v297_v22 = vpop.xlane.xlu1 %296  ;;  %v289_v23 = vpop.xlane.xlu0 %288 }
  0xcf   : > { %v328_v24 = vrot.slane %v297_v22, %v314_v19  ;;  %v291_v25 = vmul.f32 0.00390625, %v289_v23 }
  0xd1   : > { %v315_v28 = vrot.slane %v291_v25, %v314_v19  ;;  %v329_v29 = vsel %vm316_vm1, %v328_v24, %v324_v26 }
  0xd3   : > { %v317_v30 = vsel %vm316_vm1, %v315_v28, %v310_v27 }
  0xd4   : > { %v332_v31 = vsel %vm331_vm2, %v317_v30, %v329_v29 }
  0xd5   : > { %695 = vmatmul.mubr.msk.f32.vlgmr.msra.gmra.mrb[0].mxu0 %vm339_vm3, %v332_v31 }
 0x1a8   : > { %v409_v34 = vpop.f32.mrb[0].mxu0 }
 0x1a9   : > { %v410_v35 = vadd.f32 %v671_v33, %v409_v34  ;;  %v696_v36 = vpop.f32.mrb[1].mxu0 }
 0x1ab   : > { %763 = vtanh.f32 %v410_v35 }
 0x1b5   : > { %v764_v37 = vpop.eup %763 }
 0x1b6   : > { %700 = vmatmul.mubr.msk.f32.vlgmr.msra.gmra.mrb[0].mxu1 %vm420_vm5, %v764_v37 }
 0x289   : > { %v494_v39 = vpop.f32.mrb[0].mxu1 }
 0x28a   : > { %v495_v40 = vadd.f32 %v673_v38, %v494_v39  ;;  %v701_v41 = vpop.f32.mrb[1].mxu1 }
 0x28c   : > { %765 = vtanh.f32 %v495_v40 }
 0x296   : > { %v766_v42 = vpop.eup %765 }
 0x297   : > { %v500_v43 = vrot.slane %v766_v42, 1 }
 0x299   : > { %v502_v44 = vadd.f32 %v766_v42, %v500_v43 }
 0x29b   : > { %v676_v45 = vmul.f32 -1.442695, %v502_v44 }
 0x29d   : > { %767 = vpow2.f32 %v676_v45 }
 0x2a7   : > { %v768_v46 = vpop.eup %767 }
 0x2a8   : > { %v506_v47 = vadd.f32 1.0, %v768_v46 }
 0x2aa   : > { %769 = vrcp.f32 %v506_v47 }
 0x2b4   : > { %v770_v49 = vpop.eup %769 }
 0x2b5   : > { %v514_v50 = vrot.slane %v770_v49, %v513_v48  ;;  %510 = vst.msk [vmem:[%s279_s12] sm:$0x1] %vm509_vm6, %v770_v49 }
 0x2b6   : > { %814 = shalt.err (!%p811_p2)
}
 0x2b7   : > { %s815_s17 = scalar_lea.hbm %s1096_s18, 16  ;;  %s819_s12 = scalar_lea.hbm %s1184_s6, 32 }
 0x2b8   : > { %p816_p4 = scmp.ne.s32.totalorder %s1096_s18, %s815_s17  ;;  %p820_p9 = scmp.lt.u32.totalorder %s1096_s18, %s1184_s6 }
 0x2b9   : > { %p821_p1 = scmp.lt.u32.totalorder %s819_s12, %s815_s17  ;;  %p823_p6 = scmp.lt.u32.totalorder %s815_s17, %s1096_s18 }
 0x2ba   : > { %p817_p5 = pnand %p816_p4, %p1191_p11 }
 0x2bb   : > { %p822_p3 = por %p821_p1, %p820_p9 }
 0x2bc   : > { %p818_p7 = pneg %p817_p5 }
 0x2bd   : > { %p824_p12 = por %p823_p6, %p822_p3 }
 0x2bf   : > { %p825_p13 = pnand %p824_p12, %p818_p7 }
 0x2c1   : > { %828 = shalt.err (!%p825_p13)
}
 0x2c2   : > { %708 = dma.vmem_to_hbm [thread:$0]  (%p1191_p11), %s1098_s13, 16, %s1096_s18, %s536_s19   ;;  %520 = vbcast.lane.b32.xlu1 %v514_v50, 264  ;;  %516 = vbcast.lane.b32.xlu0 %v514_v50, 256 }
 0x2c3   : > { %s273_s20 = scalar_lea.vmem [#allocation5], %s669_s7  ;;  %s684_s14 = sshll.u32 %s967_s25, 9 }
 0x2c4   : > { %s548_s11 = sshll.u32 %s273_s20, 4  ;;  %s1130_s26 = scalar_lea.hbm %s1183_s5, %s684_s14  ;;  %s1125_s11 = int_to_ptr.vmem [resolvable:$true] %s548_s11 }
 0x2c5   : > { %s531_s25 = scalar_lea.sflag [#allocation4], %s1050_s29  ;;  %s829_s7 = scalar_lea.vmem %s1125_s11, 512 }
 0x2c6   : > { %p830_p8 = scmp.ne.s32.totalorder %s1125_s11, %s829_s7  ;;  %s908_s13 = smov [#allocation5]  }
 0x2c7   : > { %s833_s18 = sshll.u32 %s908_s13, 4  ;;  %s834_s18 = int_to_ptr.vmem [resolvable:$false] %s833_s18 }
 0x2c8   : > { %p831_p10 = pnand %p830_p8, %p1191_p11  ;;  %s835_s19 = scalar_lea.vmem %s834_s18, 1024 }
 0x2c9   : > { %p836_p2 = scmp.lt.s32.totalorder %s1125_s11, %s834_s18  ;;  %p837_p4 = scmp.lt.s32.totalorder %s835_s19, %s829_s7 }
 0x2ca   : > { %p832_p0 = pneg %p831_p10 }
 0x2cb   : > { %p838_p5 = por %p837_p4, %p836_p2 }
 0x2cd   : > { %p839_p7 = pnand %p838_p5, %p832_p0 }
 0x334   : > { %v521_v51 = vpop.permute.xlu1 %520  ;;  %v517_v52 = vpop.permute.xlu0 %516 }
 0x335   : > { %v524_v53 = vmul.f32 %v521_v51, %v1064_v2  ;;  %v525_v54 = vmul.f32 %v521_v51, %v1070_v5  ;;  %v522_v55 = vmul.f32 %v517_v52, %v1060_v0  ;;  %v523_v56 = vmul.f32 %v517_v52, %v1062_v1 }
 0x337   : > { %528 = vst [vmem:[%s273_s20 + $0x10] sm:$0xff] %v524_v53  ;;  %529 = vst [vmem:[%s273_s20 + $0x18] sm:$0xff] %v525_v54 }
 0x338   : > { %526 = vst [vmem:[%s273_s20] sm:$0xff] %v522_v55  ;;  %527 = vst [vmem:[%s273_s20 + $0x8] sm:$0xff] %v523_v56 }
 0x339   : > { %842 = shalt.err (!%p839_p7)
}
 0x33a   : > { %s843_s28 = scalar_lea.hbm %s1130_s26, 512  ;;  %s847_s16 = scalar_lea.hbm %s1183_s5, 1024 }
 0x33b   : > { %p844_p9 = scmp.ne.s32.totalorder %s1130_s26, %s843_s28  ;;  %p848_p6 = scmp.lt.u32.totalorder %s1130_s26, %s1183_s5 }
 0x33c   : > { %p849_p12 = scmp.lt.u32.totalorder %s847_s16, %s843_s28  ;;  %p851_p8 = scmp.lt.u32.totalorder %s843_s28, %s1130_s26 }
 0x33d   : > { %p845_p1 = pnand %p844_p9, %p1191_p11 }
 0x33e   : > { %p850_p13 = por %p849_p12, %p848_p6 }
 0x33f   : > { %p846_p3 = pneg %p845_p1 }
 0x340   : > { %p852_p10 = por %p851_p8, %p850_p13 }
 0x342   : > { %p853_p0 = pnand %p852_p10, %p846_p3 }
 0x344   : > { %856 = shalt.err (!%p853_p0)
}
 0x345   : > { %s909_s15 = smov 256   ;;  %s910_s17 = smov 16  }
 0x346   : > { %707 = dma.vmem_to_hbm [thread:$0]  (%p1191_p11), %s1125_s11, 512, %s1130_s26, %s531_s25, %s909_s15, %s909_s15, %s910_s17  }
 0x347 PF: > { %s576_s7 = sand.u32 1, %s887_s21   ;;  %p1192_p2 = scmp.ne.s32.totalorder %s1189_s10, 0 }
 0x348   : > { %p1193_p4 = scmp.ge.s32.totalorder %s899_s24, 2  ;;  %s577_s13 = scalar_lea.sflag [#allocation4], %s576_s7 }
 0x34a   : > { %p716_p5 = pnand %p1193_p4, %p1192_p2 }
 0x34c   : > { %878 = dma.done.wait (!%p716_p5), %s577_s13, 512  }
 0x34d   : > { %880 = vsyncadd (!%p716_p5), %s577_s13, 4294966784  ;;  %s586_s18 = scalar_lea.sflag [#allocation7], %s576_s7 }
 0x34e   : > { %882 = dma.done.wait (!%p716_p5), %s586_s18, 16  }
 0x34f   : > { %884 = vsyncadd (!%p716_p5), %s586_s18, 4294967280  ;;  %p23_p11 = scmp.ge.s32.totalorder %s971_s27, 4   ;;  %s1194_s21 = smov %s891_s22 }
 0x350   : > { %s1195_s22 = smov %s895_s23  ;;  %s1196_s23 = smov %s983_s30 }
 0x351   : > { %s1197_s24 = smov %s971_s27  ;;  %25 = sbr.rel (!%p23_p11) target bundleno = 7 (0x7), region = 102 }
 0x358   :  { %590 = vsyncpa [#allocation3], 1 }
 0x359   :  { %592 = vsyncpa [#allocation3 + $0x1], 1 }
 0x35a   :  { %593 = vsyncpa [#allocation4], 1 }
 0x35b   :  { %595 = vsyncpa [#allocation4 + $0x1], 1 }
 0x35c   :  { %596 = vsyncpa [#allocation7], 1 }
 0x35d   :  { %598 = vsyncpa [#allocation7 + $0x1], 1 }

</bundles_post_ra>
